<compile_context>
chip_gen: v6e
topology: v6e:2x2x1
jax: 0.10.0
libtpu: 0.0.40
codegen_flags: <defaults>
</compile_context>

<pallas_src>
import functools

import jax
import jax.numpy as jnp
from jax.experimental import pallas as pl
from jax.experimental.pallas import tpu as pltpu

INV_SQRT2 = 0.7071067811865476
LN_EPS = 1e-5


def _gelu_exact(x):
    # nn.GELU() default: exact erf form.
    return 0.5 * x * (1.0 + jax.lax.erf(x * INV_SQRT2))


def _mish(x):
    # mish(x) = x * tanh(softplus(x)); overflow-safe softplus using only exp/log/max.
    sp = jnp.log(1.0 + jnp.exp(-jnp.abs(x))) + jnp.maximum(x, 0.0)
    return x * jnp.tanh(sp)


def _mixer_block_token_kernel(
    x_ref,       # (Bb, S, H) f32
    gamma_ref,   # (1, H)      LayerNorm weight
    beta_ref,    # (1, H)      LayerNorm bias
    w1_ref,      # (T, S)      fc1 weight (torch orientation), matmul dtype
    b1_ref,      # (T, 1)      fc1 bias (column)
    w2_ref,      # (S, T)      fc2 weight (torch orientation), matmul dtype
    b2_ref,      # (S, 1)      fc2 bias (column)
    sew1t_ref,   # (S, S//r)   SE excitation fc1 weight, pre-transposed
    sew2t_ref,   # (S//r, S)   SE excitation fc2 weight, pre-transposed
    o_ref,       # (Bb, S, H)
    *,
    matmul_dtype,
    activation,
):
    Bb, S, H = x_ref.shape

    gamma = gamma_ref[...]
    beta = beta_ref[...]
    w1 = w1_ref[...]
    w2 = w2_ref[...]
    b1 = b1_ref[...]
    b2 = b2_ref[...]

    act = _gelu_exact if activation == "gelu" else _mish

    # Token-mixing MLP with the weights on the LEFT: activations keep H on the lane
    # axis throughout, so no transposes are ever materialized.
    u_rows = []
    for b in range(Bb):                                    # static unroll over the slab
        xb = x_ref[b]                                      # (S, H) f32

        # ---- LayerNorm over H (lane reduction), two-pass form for numerical safety ----
        mu = jnp.mean(xb, axis=1, keepdims=True)
        xc = xb - mu
        var = jnp.mean(xc * xc, axis=1, keepdims=True)
        ln = xc * jax.lax.rsqrt(var + LN_EPS) * gamma + beta           # (S, H)

        # ---- fc1 / act / fc2 along the seq dim; f32 accumulation on the MXU ----
        h = jnp.dot(w1, ln.astype(matmul_dtype),
                    preferred_element_type=jnp.float32) + b1           # (T, H)
        h = act(h)
        u = jnp.dot(w2, h.astype(matmul_dtype),
                    preferred_element_type=jnp.float32) + b2           # (S, H)
        u_rows.append(u)

    u = jnp.stack(u_rows, axis=0)                          # (Bb, S, H)

    # ---- SELayer(seq_len): squeeze over H, excitation batched over the slab ----
    pooled = jnp.mean(u, axis=2)                           # (Bb, S)
    e = jnp.maximum(
        jnp.dot(pooled, sew1t_ref[...], preferred_element_type=jnp.float32), 0.0)
    scale = jax.nn.sigmoid(
        jnp.dot(e, sew2t_ref[...], preferred_element_type=jnp.float32))  # (Bb, S)

    y = u * scale[:, :, None]                              # (Bb, S, H)

    # PyTorch forward: `x = x + y; return x + y`  ->  x + 2*y
    o_ref[...] = (x_ref[...] + 2.0 * y).astype(o_ref.dtype)


def _vmem_budget_bytes():
    """Per-generation VMEM budget: ~3/4 of physical, capped at 100 MiB (v5e/v6e),
    conservative 64 MiB physical fallback (v7x per-TC) when the query is unavailable."""
    phys = 64 * 1024 * 1024
    try:
        phys = int(pltpu.get_tpu_info().vmem_capacity_bytes)
    except Exception:
        pass
    return max(32 * 1024 * 1024, min(100 * 1024 * 1024, (phys * 3) // 4))


def _pick_block_b(B, S, H, weight_bytes, vmem_budget):
    """Largest batch slab that fits the VMEM budget (x/out double-buffered plus
    ln/u/cast intermediates ~ 10 live f32 copies of a (1,S,H) slab per batch elem)."""
    per_b = 10 * S * H * 4
    avail = vmem_budget - 2 * weight_bytes - (2 << 20)
    cap = max(1, avail // per_b)
    divisors = [d for d in range(1, B + 1) if B % d == 0]
    fitting = [d for d in divisors if d <= cap]
    best = max(fitting) if fitting else 1
    # Keep >= 2 grid steps (v7x 2-TC megacore) only when the halved slab is still big
    # enough (>= 8 MiB) to amortize the ~0.35us per-grid-step overhead.
    if best == B and B >= 2:
        smaller = max(d for d in divisors if d < B)
        if smaller * S * H * 4 >= (8 << 20):
            best = smaller
    return best


def mixer_block_token(x, params, *, matmul_dtype=jnp.bfloat16, activation="gelu",
                      block_b=None, vmem_limit_bytes=None):
    """x: (B, S, H) float32. params: dict of weights in torch orientation (see kernel).

    Note: for production shapes, pad S/T/H to multiples of 128 on the host for
    unmasked lane-dense stores and full MXU tiles; not done here to keep the small
    demo shapes exact.
    """
    B, S, H = x.shape
    T = params["w1"].shape[0]
    S_r = params["se_w1t"].shape[1]

    # Host-side pre-cast of the big token-mixing weights (bf16 MXU fast path on
    # v6e/v7x/v5e; f32 path available via matmul_dtype=jnp.float32).
    w1 = params["w1"].astype(matmul_dtype)
    w2 = params["w2"].astype(matmul_dtype)

    small = (params["ln_gamma"], params["ln_beta"], params["b1"], params["b2"],
             params["se_w1t"], params["se_w2t"])
    weight_bytes = (int(w1.size) + int(w2.size)) * jnp.dtype(matmul_dtype).itemsize \
        + sum(int(a.size) * 4 for a in small)

    if vmem_limit_bytes is None:
        vmem_limit_bytes = _vmem_budget_bytes()
    if block_b is None:
        block_b = _pick_block_b(B, S, H, weight_bytes, vmem_limit_bytes)
    assert B % block_b == 0, (B, block_b)
    grid = (B // block_b,)

    kernel = functools.partial(_mixer_block_token_kernel,
                               matmul_dtype=matmul_dtype, activation=activation)

    def full(arr):
        n = arr.ndim
        return pl.BlockSpec(arr.shape, lambda i, _n=n: (0,) * _n)

    flops = 4 * B * S * T * H + 4 * B * S * S_r + 14 * B * S * H
    transcendentals = B * T * H + 2 * B * S
    bytes_accessed = 2 * B * S * H * 4 + weight_bytes

    return pl.pallas_call(
        kernel,
        out_shape=jax.ShapeDtypeStruct((B, S, H), x.dtype),
        grid=grid,
        in_specs=[
            pl.BlockSpec((block_b, S, H), lambda i: (i, 0, 0)),
            full(params["ln_gamma"]), full(params["ln_beta"]),
            full(w1), full(params["b1"]),
            full(w2), full(params["b2"]),
            full(params["se_w1t"]), full(params["se_w2t"]),
        ],
        out_specs=pl.BlockSpec((block_b, S, H), lambda i: (i, 0, 0)),
        compiler_params=pltpu.CompilerParams(
            dimension_semantics=("parallel",),
            vmem_limit_bytes=int(vmem_limit_bytes),
        ),
        cost_estimate=pl.CostEstimate(
            flops=int(flops), transcendentals=int(transcendentals),
            bytes_accessed=int(bytes_accessed)),
    )(
        x,
        params["ln_gamma"], params["ln_beta"],
        w1, params["b1"],
        w2, params["b2"],
        params["se_w1t"], params["se_w2t"],
    )


def reference_forward(x, params, activation="gelu"):
    """Pure-JAX reference mirroring the PyTorch MixerBlock_Token.forward."""
    hp = jax.lax.Precision.HIGHEST
    mu = jnp.mean(x, axis=-1, keepdims=True)
    var = jnp.mean((x - mu) ** 2, axis=-1, keepdims=True)
    y = (x - mu) / jnp.sqrt(var + LN_EPS)
    y = y * params["ln_gamma"][0] + params["ln_beta"][0]
    y = jnp.swapaxes(y, 1, 2)                                            # (B, H, S)
    h = jnp.einsum("bhs,ts->bht", y, params["w1"], precision=hp) + params["b1"][:, 0]
    if activation == "gelu":
        h = 0.5 * h * (1.0 + jax.lax.erf(h * INV_SQRT2))
    else:
        h = h * jnp.tanh(jnp.logaddexp(h, 0.0))
    y = jnp.einsum("bht,st->bhs", h, params["w2"], precision=hp) + params["b2"][:, 0]
    y = jnp.swapaxes(y, 1, 2)                                            # (B, S, H)
    pooled = jnp.mean(y, axis=2)                                         # (B, S)
    e = jax.nn.relu(jnp.einsum("bs,sr->br", pooled, params["se_w1t"], precision=hp))
    scale = jax.nn.sigmoid(jnp.einsum("br,rs->bs", e, params["se_w2t"], precision=hp))
    y = y * scale[:, :, None]
    return x + 2.0 * y                                                   # x = x+y; return x+y


def make_params(key, seq_len, hidden_dim, tokens_mlp_dim, r_se=4):
    ks = jax.random.split(key, 8)
    s_r = seq_len // r_se
    f32 = jnp.float32
    return {
        # LayerNorm(hidden_dim)
        "ln_gamma": 1.0 + 0.1 * jax.random.normal(ks[0], (1, hidden_dim), f32),
        "ln_beta": 0.1 * jax.random.normal(ks[1], (1, hidden_dim), f32),
        # MlpBlock(tokens_mlp_dim, seq_len, hidden_dim), torch orientation:
        # fc1 = Linear(S, T): weight (T, S); fc2 = Linear(T, S): weight (S, T).
        "w1": 0.2 * jax.random.normal(ks[2], (tokens_mlp_dim, seq_len), f32),
        "b1": 0.1 * jax.random.normal(ks[3], (tokens_mlp_dim, 1), f32),
        "w2": 0.2 * jax.random.normal(ks[4], (seq_len, tokens_mlp_dim), f32),
        "b2": 0.1 * jax.random.normal(ks[5], (seq_len, 1), f32),
        # SELayer(seq_len, r=r_se): Linear(S, S//r, bias=False), Linear(S//r, S, bias=False)
        # stored pre-transposed (tiny, host side) so the kernel does `pooled @ w`.
        "se_w1t": 0.3 * jax.random.normal(ks[6], (seq_len, s_r), f32),
        "se_w2t": 0.3 * jax.random.normal(ks[7], (s_r, seq_len), f32),
    }


if __name__ == "__main__":
    # batch, seq_len, hidden_dim, tokens_mlp_dim (small demo shapes).
    B, S, H, T = 2, 8, 32, 16

    key = jax.random.PRNGKey(0)
    kx, kp = jax.random.split(key)
    x = jax.random.normal(kx, (B, S, H), jnp.float32)
    params = make_params(kp, seq_len=S, hidden_dim=H, tokens_mlp_dim=T, r_se=4)

    # f32 MXU operands: tight correctness check against the reference (gelu).
    out = jax.block_until_ready(mixer_block_token(x, params, matmul_dtype=jnp.float32))
    ref = jax.block_until_ready(reference_forward(x, params))
    assert out.shape == (B, S, H)
    assert jnp.allclose(out, ref, atol=1e-3, rtol=1e-3), float(jnp.max(jnp.abs(out - ref)))

    # mish activation path (f32).
    out_m = jax.block_until_ready(
        mixer_block_token(x, params, matmul_dtype=jnp.float32, activation="mish"))
    ref_m = reference_forward(x, params, activation="mish")
    assert jnp.allclose(out_m, ref_m, atol=1e-3, rtol=1e-3), \
        float(jnp.max(jnp.abs(out_m - ref_m)))

    # Default bf16 MXU fast path (v5e/v6e/v7x): f32 accumulation, loose tolerance.
    out_bf16 = jax.block_until_ready(mixer_block_token(x, params))
    assert float(jnp.max(jnp.abs(out_bf16 - ref))) < 0.1

    print("KERNEL_OK")
</pallas_src>

<mosaic_0001>
module attributes {stable_mosaic.version = 11 : i64} {
  func.func @_mixer_block_token_kernel(%arg0: i32, %arg1: memref<2x8x32xf32, #tpu.memory_space<vmem>>, %arg2: memref<1x32xf32, #tpu.memory_space<vmem>>, %arg3: memref<1x32xf32, #tpu.memory_space<vmem>>, %arg4: memref<16x8xf32, #tpu.memory_space<vmem>>, %arg5: memref<16x1xf32, #tpu.memory_space<vmem>>, %arg6: memref<8x16xf32, #tpu.memory_space<vmem>>, %arg7: memref<8x1xf32, #tpu.memory_space<vmem>>, %arg8: memref<8x2xf32, #tpu.memory_space<vmem>>, %arg9: memref<2x8xf32, #tpu.memory_space<vmem>>, %arg10: memref<2x8x32xf32, #tpu.memory_space<vmem>>) attributes {dimension_semantics = [#tpu.dimension_semantics<parallel>], iteration_bounds = array<i64: 1>, scalar_prefetch = 0 : i64, scratch_operands = 0 : i64, tpu.core_type = #tpu.core_type<tc>, window_params = [{transform_indices = @transform_0, window_bounds = array<i64: 2, 8, 32>}, {pipeline_mode = #tpu.pipeline_mode<synchronous>, transform_indices = @transform_1, window_bounds = array<i64: 1, 32>}, {pipeline_mode = #tpu.pipeline_mode<synchronous>, transform_indices = @transform_2, window_bounds = array<i64: 1, 32>}, {pipeline_mode = #tpu.pipeline_mode<synchronous>, transform_indices = @transform_3, window_bounds = array<i64: 16, 8>}, {pipeline_mode = #tpu.pipeline_mode<synchronous>, transform_indices = @transform_4, window_bounds = array<i64: 16, 1>}, {pipeline_mode = #tpu.pipeline_mode<synchronous>, transform_indices = @transform_5, window_bounds = array<i64: 8, 16>}, {pipeline_mode = #tpu.pipeline_mode<synchronous>, transform_indices = @transform_6, window_bounds = array<i64: 8, 1>}, {pipeline_mode = #tpu.pipeline_mode<synchronous>, transform_indices = @transform_7, window_bounds = array<i64: 8, 2>}, {pipeline_mode = #tpu.pipeline_mode<synchronous>, transform_indices = @transform_8, window_bounds = array<i64: 2, 8>}, {transform_indices = @transform_9, window_bounds = array<i64: 2, 8, 32>}]} {
    %c0 = arith.constant 0 : index
    %c0_0 = arith.constant 0 : index
    %0 = vector.load %arg2[%c0, %c0_0] : memref<1x32xf32, #tpu.memory_space<vmem>>, vector<1x32xf32>
    %c0_1 = arith.constant 0 : index
    %c0_2 = arith.constant 0 : index
    %1 = vector.load %arg3[%c0_1, %c0_2] : memref<1x32xf32, #tpu.memory_space<vmem>>, vector<1x32xf32>
    %c0_3 = arith.constant 0 : index
    %c0_4 = arith.constant 0 : index
    %2 = vector.load %arg4[%c0_3, %c0_4] : memref<16x8xf32, #tpu.memory_space<vmem>>, vector<16x8xf32>
    %c0_5 = arith.constant 0 : index
    %c0_6 = arith.constant 0 : index
    %3 = vector.load %arg6[%c0_5, %c0_6] : memref<8x16xf32, #tpu.memory_space<vmem>>, vector<8x16xf32>
    %c0_7 = arith.constant 0 : index
    %c0_8 = arith.constant 0 : index
    %4 = vector.load %arg5[%c0_7, %c0_8] : memref<16x1xf32, #tpu.memory_space<vmem>>, vector<16x1xf32>
    %c0_9 = arith.constant 0 : index
    %c0_10 = arith.constant 0 : index
    %5 = vector.load %arg7[%c0_9, %c0_10] : memref<8x1xf32, #tpu.memory_space<vmem>>, vector<8x1xf32>
    %c0_11 = arith.constant 0 : index
    %c0_12 = arith.constant 0 : index
    %c0_13 = arith.constant 0 : index
    %6 = vector.load %arg1[%c0_11, %c0_12, %c0_13] : memref<2x8x32xf32, #tpu.memory_space<vmem>>, vector<1x8x32xf32>
    %7 = vector.shape_cast %6 : vector<1x8x32xf32> to vector<8x32xf32>
    %cst = arith.constant dense<0.000000e+00> : vector<8xf32>
    %8 = vector.multi_reduction <add>, %7, %cst [1] : vector<8x32xf32> to vector<8xf32>
    %9 = vector.shape_cast %8 : vector<8xf32> to vector<8x1xf32>
    %cst_14 = arith.constant 3.200000e+01 : f32
    %10 = vector.broadcast %cst_14 : f32 to vector<8x1xf32>
    %11 = arith.divf %9, %10 : vector<8x1xf32>
    %12 = vector.broadcast %11 : vector<8x1xf32> to vector<8x32xf32>
    %13 = arith.subf %7, %12 : vector<8x32xf32>
    %14 = arith.mulf %13, %13 : vector<8x32xf32>
    %cst_15 = arith.constant dense<0.000000e+00> : vector<8xf32>
    %15 = vector.multi_reduction <add>, %14, %cst_15 [1] : vector<8x32xf32> to vector<8xf32>
    %16 = vector.shape_cast %15 : vector<8xf32> to vector<8x1xf32>
    %cst_16 = arith.constant 3.200000e+01 : f32
    %17 = vector.broadcast %cst_16 : f32 to vector<8x1xf32>
    %18 = arith.divf %16, %17 : vector<8x1xf32>
    %cst_17 = arith.constant 9.99999974E-6 : f32
    %19 = vector.broadcast %cst_17 : f32 to vector<8x1xf32>
    %20 = arith.addf %18, %19 : vector<8x1xf32>
    %21 = math.rsqrt %20 : vector<8x1xf32>
    %22 = vector.broadcast %21 : vector<8x1xf32> to vector<8x32xf32>
    %23 = arith.mulf %13, %22 : vector<8x32xf32>
    %24 = vector.broadcast %0 : vector<1x32xf32> to vector<8x32xf32>
    %25 = arith.mulf %23, %24 : vector<8x32xf32>
    %26 = vector.broadcast %1 : vector<1x32xf32> to vector<8x32xf32>
    %27 = arith.addf %25, %26 : vector<8x32xf32>
    %cst_18 = arith.constant dense<0.000000e+00> : vector<16x32xf32>
    %28 = tpu.matmul %2, %27, %cst_18 {dimension_numbers = #tpu.dot_dimension_numbers<[1], [0], [0], [1], [0, 0, 1, 1], [], []>} : vector<16x8xf32>, vector<8x32xf32>, vector<16x32xf32> -> vector<16x32xf32>
    %29 = vector.broadcast %4 : vector<16x1xf32> to vector<16x32xf32>
    %30 = arith.addf %28, %29 : vector<16x32xf32>
    %cst_19 = arith.constant 5.000000e-01 : f32
    %31 = vector.broadcast %cst_19 : f32 to vector<16x32xf32>
    %32 = arith.mulf %31, %30 : vector<16x32xf32>
    %cst_20 = arith.constant 0.707106769 : f32
    %33 = vector.broadcast %cst_20 : f32 to vector<16x32xf32>
    %34 = arith.mulf %30, %33 : vector<16x32xf32>
    %35 = math.erf %34 : vector<16x32xf32>
    %cst_21 = arith.constant 1.000000e+00 : f32
    %36 = vector.broadcast %cst_21 : f32 to vector<16x32xf32>
    %37 = arith.addf %36, %35 : vector<16x32xf32>
    %38 = arith.mulf %32, %37 : vector<16x32xf32>
    %cst_22 = arith.constant dense<0.000000e+00> : vector<8x32xf32>
    %39 = tpu.matmul %3, %38, %cst_22 {dimension_numbers = #tpu.dot_dimension_numbers<[1], [0], [0], [1], [0, 0, 1, 1], [], []>} : vector<8x16xf32>, vector<16x32xf32>, vector<8x32xf32> -> vector<8x32xf32>
    %40 = vector.broadcast %5 : vector<8x1xf32> to vector<8x32xf32>
    %41 = arith.addf %39, %40 : vector<8x32xf32>
    %c1 = arith.constant 1 : index
    %c0_23 = arith.constant 0 : index
    %c0_24 = arith.constant 0 : index
    %42 = vector.load %arg1[%c1, %c0_23, %c0_24] : memref<2x8x32xf32, #tpu.memory_space<vmem>>, vector<1x8x32xf32>
    %43 = vector.shape_cast %42 : vector<1x8x32xf32> to vector<8x32xf32>
    %cst_25 = arith.constant dense<0.000000e+00> : vector<8xf32>
    %44 = vector.multi_reduction <add>, %43, %cst_25 [1] : vector<8x32xf32> to vector<8xf32>
    %45 = vector.shape_cast %44 : vector<8xf32> to vector<8x1xf32>
    %cst_26 = arith.constant 3.200000e+01 : f32
    %46 = vector.broadcast %cst_26 : f32 to vector<8x1xf32>
    %47 = arith.divf %45, %46 : vector<8x1xf32>
    %48 = vector.broadcast %47 : vector<8x1xf32> to vector<8x32xf32>
    %49 = arith.subf %43, %48 : vector<8x32xf32>
    %50 = arith.mulf %49, %49 : vector<8x32xf32>
    %cst_27 = arith.constant dense<0.000000e+00> : vector<8xf32>
    %51 = vector.multi_reduction <add>, %50, %cst_27 [1] : vector<8x32xf32> to vector<8xf32>
    %52 = vector.shape_cast %51 : vector<8xf32> to vector<8x1xf32>
    %cst_28 = arith.constant 3.200000e+01 : f32
    %53 = vector.broadcast %cst_28 : f32 to vector<8x1xf32>
    %54 = arith.divf %52, %53 : vector<8x1xf32>
    %cst_29 = arith.constant 9.99999974E-6 : f32
    %55 = vector.broadcast %cst_29 : f32 to vector<8x1xf32>
    %56 = arith.addf %54, %55 : vector<8x1xf32>
    %57 = math.rsqrt %56 : vector<8x1xf32>
    %58 = vector.broadcast %57 : vector<8x1xf32> to vector<8x32xf32>
    %59 = arith.mulf %49, %58 : vector<8x32xf32>
    %60 = vector.broadcast %0 : vector<1x32xf32> to vector<8x32xf32>
    %61 = arith.mulf %59, %60 : vector<8x32xf32>
    %62 = vector.broadcast %1 : vector<1x32xf32> to vector<8x32xf32>
    %63 = arith.addf %61, %62 : vector<8x32xf32>
    %cst_30 = arith.constant dense<0.000000e+00> : vector<16x32xf32>
    %64 = tpu.matmul %2, %63, %cst_30 {dimension_numbers = #tpu.dot_dimension_numbers<[1], [0], [0], [1], [0, 0, 1, 1], [], []>} : vector<16x8xf32>, vector<8x32xf32>, vector<16x32xf32> -> vector<16x32xf32>
    %65 = vector.broadcast %4 : vector<16x1xf32> to vector<16x32xf32>
    %66 = arith.addf %64, %65 : vector<16x32xf32>
    %cst_31 = arith.constant 5.000000e-01 : f32
    %67 = vector.broadcast %cst_31 : f32 to vector<16x32xf32>
    %68 = arith.mulf %67, %66 : vector<16x32xf32>
    %cst_32 = arith.constant 0.707106769 : f32
    %69 = vector.broadcast %cst_32 : f32 to vector<16x32xf32>
    %70 = arith.mulf %66, %69 : vector<16x32xf32>
    %71 = math.erf %70 : vector<16x32xf32>
    %cst_33 = arith.constant 1.000000e+00 : f32
    %72 = vector.broadcast %cst_33 : f32 to vector<16x32xf32>
    %73 = arith.addf %72, %71 : vector<16x32xf32>
    %74 = arith.mulf %68, %73 : vector<16x32xf32>
    %cst_34 = arith.constant dense<0.000000e+00> : vector<8x32xf32>
    %75 = tpu.matmul %3, %74, %cst_34 {dimension_numbers = #tpu.dot_dimension_numbers<[1], [0], [0], [1], [0, 0, 1, 1], [], []>} : vector<8x16xf32>, vector<16x32xf32>, vector<8x32xf32> -> vector<8x32xf32>
    %76 = vector.broadcast %5 : vector<8x1xf32> to vector<8x32xf32>
    %77 = arith.addf %75, %76 : vector<8x32xf32>
    %78 = vector.shape_cast %41 : vector<8x32xf32> to vector<1x8x32xf32>
    %79 = vector.shape_cast %77 : vector<8x32xf32> to vector<1x8x32xf32>
    %80 = tpu.concatenate %78, %79 in 0 : vector<1x8x32xf32>, vector<1x8x32xf32> -> vector<2x8x32xf32>
    %cst_35 = arith.constant dense<0.000000e+00> : vector<2x8xf32>
    %81 = vector.multi_reduction <add>, %80, %cst_35 [2] : vector<2x8x32xf32> to vector<2x8xf32>
    %cst_36 = arith.constant 3.200000e+01 : f32
    %82 = vector.broadcast %cst_36 : f32 to vector<2x8xf32>
    %83 = arith.divf %81, %82 : vector<2x8xf32>
    %c0_37 = arith.constant 0 : index
    %c0_38 = arith.constant 0 : index
    %84 = vector.load %arg8[%c0_37, %c0_38] : memref<8x2xf32, #tpu.memory_space<vmem>>, vector<8x2xf32>
    %cst_39 = arith.constant dense<0.000000e+00> : vector<2x2xf32>
    %85 = tpu.matmul %83, %84, %cst_39 {dimension_numbers = #tpu.dot_dimension_numbers<[1], [0], [0], [1], [0, 0, 1, 1], [], []>} : vector<2x8xf32>, vector<8x2xf32>, vector<2x2xf32> -> vector<2x2xf32>
    %cst_40 = arith.constant 0.000000e+00 : f32
    %86 = vector.broadcast %cst_40 : f32 to vector<2x2xf32>
    %87 = arith.maximumf %85, %86 : vector<2x2xf32>
    %c0_41 = arith.constant 0 : index
    %c0_42 = arith.constant 0 : index
    %88 = vector.load %arg9[%c0_41, %c0_42] : memref<2x8xf32, #tpu.memory_space<vmem>>, vector<2x8xf32>
    %cst_43 = arith.constant dense<0.000000e+00> : vector<2x8xf32>
    %89 = tpu.matmul %87, %88, %cst_43 {dimension_numbers = #tpu.dot_dimension_numbers<[1], [0], [0], [1], [0, 0, 1, 1], [], []>} : vector<2x2xf32>, vector<2x8xf32>, vector<2x8xf32> -> vector<2x8xf32>
    %90 = arith.negf %89 : vector<2x8xf32>
    %91 = math.exp %90 : vector<2x8xf32>
    %cst_44 = arith.constant 1.000000e+00 : f32
    %92 = vector.broadcast %cst_44 : f32 to vector<2x8xf32>
    %93 = arith.addf %92, %91 : vector<2x8xf32>
    %94 = arith.divf %92, %93 : vector<2x8xf32>
    %95 = vector.shape_cast %94 : vector<2x8xf32> to vector<2x8x1xf32>
    %96 = vector.broadcast %95 : vector<2x8x1xf32> to vector<2x8x32xf32>
    %97 = arith.mulf %80, %96 : vector<2x8x32xf32>
    %c0_45 = arith.constant 0 : index
    %c0_46 = arith.constant 0 : index
    %c0_47 = arith.constant 0 : index
    %98 = vector.load %arg1[%c0_45, %c0_46, %c0_47] : memref<2x8x32xf32, #tpu.memory_space<vmem>>, vector<2x8x32xf32>
    %cst_48 = arith.constant 2.000000e+00 : f32
    %99 = vector.broadcast %cst_48 : f32 to vector<2x8x32xf32>
    %100 = arith.mulf %99, %97 : vector<2x8x32xf32>
    %101 = arith.addf %98, %100 : vector<2x8x32xf32>
    %c0_49 = arith.constant 0 : index
    %c0_50 = arith.constant 0 : index
    %c0_51 = arith.constant 0 : index
    %102 = vector.load %arg10[%c0_49, %c0_50, %c0_51] : memref<2x8x32xf32, #tpu.memory_space<vmem>>, vector<2x8x32xf32>
    tpu.vector_store %arg10[%c0_49, %c0_50, %c0_51], %101 {strides = array<i32>} : memref<2x8x32xf32, #tpu.memory_space<vmem>>, vector<2x8x32xf32>,
    return
  }
  func.func @transform_0(%arg0: i32) -> (i32, i32, i32) {
    %c0_i32 = arith.constant 0 : i32
    %c0_i32_0 = arith.constant 0 : i32
    %c0_i32_1 = arith.constant 0 : i32
    return %arg0, %c0_i32, %c0_i32_0 : i32, i32, i32
  }
  func.func @transform_1(%arg0: i32) -> (i32, i32) {
    %c0_i32 = arith.constant 0 : i32
    %c0_i32_0 = arith.constant 0 : i32
    %c0_i32_1 = arith.constant 0 : i32
    return %c0_i32, %c0_i32_0 : i32, i32
  }
  func.func @transform_2(%arg0: i32) -> (i32, i32) {
    %c0_i32 = arith.constant 0 : i32
    %c0_i32_0 = arith.constant 0 : i32
    %c0_i32_1 = arith.constant 0 : i32
    return %c0_i32, %c0_i32_0 : i32, i32
  }
  func.func @transform_3(%arg0: i32) -> (i32, i32) {
    %c0_i32 = arith.constant 0 : i32
    %c0_i32_0 = arith.constant 0 : i32
    %c0_i32_1 = arith.constant 0 : i32
    return %c0_i32, %c0_i32_0 : i32, i32
  }
  func.func @transform_4(%arg0: i32) -> (i32, i32) {
    %c0_i32 = arith.constant 0 : i32
    %c0_i32_0 = arith.constant 0 : i32
    %c0_i32_1 = arith.constant 0 : i32
    return %c0_i32, %c0_i32_0 : i32, i32
  }
  func.func @transform_5(%arg0: i32) -> (i32, i32) {
    %c0_i32 = arith.constant 0 : i32
    %c0_i32_0 = arith.constant 0 : i32
    %c0_i32_1 = arith.constant 0 : i32
    return %c0_i32, %c0_i32_0 : i32, i32
  }
  func.func @transform_6(%arg0: i32) -> (i32, i32) {
    %c0_i32 = arith.constant 0 : i32
    %c0_i32_0 = arith.constant 0 : i32
    %c0_i32_1 = arith.constant 0 : i32
    return %c0_i32, %c0_i32_0 : i32, i32
  }
  func.func @transform_7(%arg0: i32) -> (i32, i32) {
    %c0_i32 = arith.constant 0 : i32
    %c0_i32_0 = arith.constant 0 : i32
    %c0_i32_1 = arith.constant 0 : i32
    return %c0_i32, %c0_i32_0 : i32, i32
  }
  func.func @transform_8(%arg0: i32) -> (i32, i32) {
    %c0_i32 = arith.constant 0 : i32
    %c0_i32_0 = arith.constant 0 : i32
    %c0_i32_1 = arith.constant 0 : i32
    return %c0_i32, %c0_i32_0 : i32, i32
  }
  func.func @transform_9(%arg0: i32) -> (i32, i32, i32) {
    %c0_i32 = arith.constant 0 : i32
    %c0_i32_0 = arith.constant 0 : i32
    %c0_i32_1 = arith.constant 0 : i32
    return %arg0, %c0_i32, %c0_i32_0 : i32, i32, i32
  }
}

</mosaic_0001>

<bundles_post_ra>
// kernel: tpu_custom_call.1
= control target key start
LH: loop header
LB: loop body
LE: loop exit
PB: predicated region body
PF: predicated region fallthrough
CT: control target
= control target key end

     0   :  { %vm42_vm0 = vcmask 261120   ;;  %s876_s0 = inlined_call_operand.vmem [shape: f32[2,8,32], index: 0, kind: input, shape index: {}]   ;;  %s877_s1 = inlined_call_operand.vmem [shape: f32[1,32], index: 1, kind: input, shape index: {}]   ;;  %s878_s2 = inlined_call_operand.vmem [shape: f32[1,32], index: 2, kind: input, shape index: {}]   ;;  %s879_s3 = inlined_call_operand.vmem [shape: f32[16,8], index: 3, kind: input, shape index: {}]   ;;  %s880_s4 = inlined_call_operand.vmem [shape: f32[16,1], index: 4, kind: input, shape index: {}]   ;;  %s881_s5 = inlined_call_operand.vmem [shape: f32[8,16], index: 5, kind: input, shape index: {}]   ;;  %s882_s6 = inlined_call_operand.vmem [shape: f32[8,1], index: 6, kind: input, shape index: {}]   ;;  %s883_s7 = inlined_call_operand.vmem [shape: f32[8,2], index: 7, kind: input, shape index: {}]   ;;  %s884_s8 = inlined_call_operand.vmem [shape: f32[2,8], index: 8, kind: input, shape index: {}]   ;;  %s885_s9 = inlined_call_operand.hbm [shape: f32[2,8,32], index: 9, kind: output, shape index: {}]  }
   0x1   :  { %v813_v0 = vld [vmem:[%s876_s0] sm:$0xff]  ;;  %v818_v1 = vld [vmem:[%s876_s0 + $0x8] sm:$0xff] }
   0x2   :  { %14 = vsyncpa [#allocation3], 0  ;;  %v43_v2 = vsel %vm42_vm0, %v813_v0, 0.0  ;;  %v254_v3 = vsel %vm42_vm0, %v818_v1, 0.0  ;;  %v35_v14 = vld [vmem:[%s879_s3] sm:$0xff]  ;;  %vm81_vm1 = vcmask 64512  }
   0x3   :  { %44 = vadd.xlane.f32.xlu0 %v43_v2  ;;  %676 = vmatprep.mubr.msk.f32.mxu0 %vm81_vm1, %v35_v14  ;;  %v39_v15 = vld [vmem:[%s880_s4 + $0x8] sm:$0xff]  ;;  %v38_v16 = vld [vmem:[%s880_s4] sm:$0xff]  ;;  %v754_v17 = vmov 0   ;;  %v755_v36 = vmov 0.0   ;;  %vm756_vm2 = vmmov 0   ;;  %vm178_vm3 = vcmask 130048  }
   0x4   :  { %715 = vset.pattern.permute.xlu1 %v754_v17  ;;  %714 = vset.pattern.permute.xlu0 %v754_v17  ;;  %v40_v18 = vld [vmem:[%s882_s6] sm:$0xff]  ;;  %v36_v33 = vld [vmem:[%s879_s3 + $0x8] sm:$0xff]  ;;  %vm445_vm4 = vcmask 1041409   ;;  %vm525_vm5 = vcmask 1041408   ;;  %vm521_vm6 = vcmask 15360  }
   0x5   :  { %v645_v26 = vld [vmem:[%s877_s1] ss:$0 sm:$0xff]  ;;  %679 = vmatprep.subr.mxu1 %v755_v36  ;;  %683 = vmatprep.mubr.msk.f32.mxu1 %vm756_vm2, %v755_v36 }
   0x6   :  { %v646_v28 = vld [vmem:[%s878_s2] ss:$0 sm:$0xff] }
   0x7   :  { %255 = vadd.xlane.f32.xlu0 %v254_v3  ;;  %v37_v62 = vld [vmem:[%s881_s5] sm:$0xff] }
  0x1d   :  { %78 = vperm.xlu0 %714, %v39_v15   ;;  %v432_v15 = vld [vmem:[%s883_s7] sm:$0xff]  ;;  %s757_s7 = smov [#allocation2]  }
  0x8c   :  { %v45_v4 = vpop.xlane.xlu0 %44 }
  0x8d   :  { %v47_v5 = vmul.f32 0.03125, %v45_v4 }
  0x8f   :  { %v48_v6 = vsub.f32 %v813_v0, %v47_v5 }
  0x90   :  { %v256_v7 = vpop.xlane.xlu0 %255 }
  0x91   :  { %v257_v8 = vmul.f32 0.03125, %v256_v7  ;;  %v49_v9 = vmul.f32 %v48_v6, %v48_v6 }
  0x93   :  { %v258_v10 = vsub.f32 %v818_v1, %v257_v8  ;;  %v50_v11 = vsel %vm42_vm0, %v49_v9, 0.0 }
  0x94   :  { %51 = vadd.xlane.f32.xlu1 %v50_v11 }
  0x95   :  { %v259_v12 = vmul.f32 %v258_v10, %v258_v10 }
  0x97   :  { %v260_v13 = vsel %vm42_vm0, %v259_v12, 0.0 }
  0x98   :  { %261 = vadd.xlane.f32.xlu1 %v260_v13  ;;  %v79_v37 = vpop.permute.xlu0 %78 }
  0xa9   :  { %73 = vperm.xlu1 %715, %v38_v16   ;;  %v435_v16 = vlaneseq }
  0xab   :  { %v436_v17 = vand.u32 127, %v435_v16 }
  0xad   :  { %175 = vperm.xlu1 %715, %v40_v18   ;;  %v438_v18 = vshrl.u32 %v435_v16, 7 }
 0x11d   :  { %v52_v19 = vpop.xlane.xlu1 %51 }
 0x11e   :  { %v53_v20 = vmul.f32 0.03125, %v52_v19 }
 0x120   :  { %v54_v21 = vadd.f32 1e-05, %v53_v20  ;;  %v439_v20 = vsub.s32 %v436_v17, %v438_v18 }
 0x121   :  { %v262_v22 = vpop.xlane.xlu1 %261 }
 0x122   :  { %716 = vrsqrt.f32 %v54_v21  ;;  %v263_v23 = vmul.f32 0.03125, %v262_v22 }
 0x124   :  { %v264_v24 = vadd.f32 1e-05, %v263_v23 }
 0x125   :  { %v74_v40 = vpop.permute.xlu1 %73 }
 0x126   :  { %718 = vrsqrt.f32 %v264_v24 }
 0x12f   :  { %v717_v25 = vpop.eup %716 }
 0x130   :  { %v56_v27 = vmul.f32 %v717_v25, %v48_v6  ;;  %v176_v6 = vpop.permute.xlu1 %175 }
 0x132   :  { %v63_v29 = vmul.f32 %v645_v26, %v56_v27  ;;  %v520_v27 = vld [vmem:[%s884_s8] sm:$0x3]  ;;  %s634_s8 = sshll.u32 %s757_s7, 4  ;;  %s635_s8 = int_to_ptr.vmem [resolvable:$true] %s634_s8 }
 0x133   :  { %v719_v30 = vpop.eup %718  ;;  %s732_s26 = scalar_lea.vmem %s635_s8, 256  ;;  %p737_p1 = scmp.lt.s32.totalorder %s635_s8, %s635_s8 }
 0x134   :  { %v70_v31 = vadd.f32 %v646_v28, %v63_v29  ;;  %v266_v32 = vmul.f32 %v719_v30, %v258_v10  ;;  %p733_p0 = scmp.ne.s32.totalorder %s635_s8, %s732_s26  ;;  %p738_p2 = scmp.lt.s32.totalorder %s732_s26, %s732_s26 }
 0x136   :  { %674 = vmatprep.subr.mxu0 %v70_v31  ;;  %v267_v34 = vmul.f32 %v645_v26, %v266_v32  ;;  %p739_p3 = por %p738_p2, %p737_p1 }
 0x137   :  { %675 = vmatpush3.msra.mxu0 %v70_v31 }
 0x138   :  { %v268_v35 = vadd.f32 %v646_v28, %v267_v34  ;;  %677 = vmatmul.mubr.msk.f32.vlgmr.msra.gmra.mxu0 %vm81_vm1, %v36_v33  ;;  %p740_p4 = pnand %p739_p3, %p733_p0 }
 0x139   :  { %688 = vmatprep.mubr.msk.f32.mxu0 %vm81_vm1, %v35_v14 }
 0x13a   :  { %686 = vmatprep.subr.mxu0 %v268_v35 }
 0x13b   :  { %687 = vmatpush3.msra.mxu0 %v268_v35 }
 0x13c   :  { %689 = vmatmul.mubr.msk.f32.vlgmr.msra.gmra.mxu0 %vm81_vm1, %v36_v33  ;;  %698 = vmatprep.subr.mxu0 %v755_v36 }
 0x13d   :  { %700 = vmatprep.mubr.msk.f32.mxu0 %vm756_vm2, %v755_v36  ;;  %699 = vmatpush3.msra.mxu0 %v432_v15 }
 0x1f8   :  { %v678_v38 = vpop.f32.mrf.mxu0 }
 0x1f9   :  { %v160_v39 = vadd.f32 %v678_v38, %v79_v37 }
 0x1fa   :  { %v154_v41 = vpop.f32.mrf.mxu0 }
 0x1fb   :  { %v166_v42 = vmul.f32 0.70710677, %v160_v39  ;;  %v155_v43 = vadd.f32 %v154_v41, %v74_v40  ;;  %v164_v52 = vmul.f32 0.5, %v160_v39  ;;  %v614_v39 = vsub.s32 1, %v438_v18 }
 0x1fc   :  { %v690_v44 = vpop.f32.mrf.mxu0 }
 0x1fd   :  { %720 = verf.f32 %v166_v42  ;;  %v165_v45 = vmul.f32 0.70710677, %v155_v43  ;;  %v341_v46 = vadd.f32 %v690_v44, %v79_v37  ;;  %v163_v55 = vmul.f32 0.5, %v155_v43 }
 0x1fe   :  { %v335_v47 = vpop.f32.mrf.mxu0 }
 0x1ff   :  { %722 = verf.f32 %v165_v45  ;;  %v347_v48 = vmul.f32 0.70710677, %v341_v46  ;;  %v336_v49 = vadd.f32 %v335_v47, %v74_v40  ;;  %v345_v59 = vmul.f32 0.5, %v341_v46 }
 0x201   :  { %724 = verf.f32 %v347_v48  ;;  %v346_v50 = vmul.f32 0.70710677, %v336_v49  ;;  %v344_v3 = vmul.f32 0.5, %v336_v49 }
 0x203   :  { %726 = verf.f32 %v346_v50 }
 0x20a   :  { %v721_v51 = vpop.eup %720 }
 0x20b   :  { %v170_v53 = vadd.f32 1.0, %v721_v51 }
 0x20c   :  { %v723_v54 = vpop.eup %722 }
 0x20d   :  { %v172_v56 = vmul.f32 %v170_v53, %v164_v52  ;;  %v169_v57 = vadd.f32 1.0, %v723_v54 }
 0x20e   :  { %v725_v58 = vpop.eup %724 }
 0x20f   :  { %v351_v60 = vadd.f32 1.0, %v725_v58  ;;  %680 = vmatpush3.msra.mxu1 %v172_v56  ;;  %v171_v61 = vmul.f32 %v169_v57, %v163_v55 }
 0x210   :  { %v727_v63 = vpop.eup %726  ;;  %681 = vmatprep.subr.mxu1 %v755_v36 }
 0x211   :  { %v353_v2 = vmul.f32 %v351_v60, %v345_v59  ;;  %v350_v4 = vadd.f32 1.0, %v727_v63  ;;  %682 = vmatpush3.msra.mxu1 %v171_v61 }
 0x212   :  { %684 = vmatmul.mubr.msk.f32.vlgmr.msra.gmra.mxu1 %vm178_vm3, %v37_v62  ;;  %691 = vmatprep.subr.mxu1 %v755_v36 }
 0x213   :  { %v352_v5 = vmul.f32 %v350_v4, %v344_v3  ;;  %692 = vmatpush3.msra.mxu1 %v353_v2  ;;  %695 = vmatprep.mubr.msk.f32.mxu1 %vm756_vm2, %v755_v36 }
 0x214   :  { %693 = vmatprep.subr.mxu1 %v755_v36 }
 0x215   :  { %694 = vmatpush3.msra.mxu1 %v352_v5 }
 0x216   :  { %696 = vmatmul.mubr.msk.f32.vlgmr.msra.gmra.mxu1 %vm178_vm3, %v37_v62  ;;  %703 = vmatprep.subr.mxu1 %v755_v36 }
 0x217   :  { %705 = vmatprep.mubr.msk.f32.mxu1 %vm756_vm2, %v755_v36  ;;  %704 = vmatpush3.msk.msra.mxu1 %vm525_vm5, %v520_v27  ;;  %v607_v36 = vsub.s32 0, %v438_v18 }
 0x2d2   :  { %v248_v7 = vpop.f32.mrf.mxu1 }
 0x2d3   :  { %v249_v8 = vadd.f32 %v248_v7, %v176_v6 }
 0x2d4   :  { %v685_v9 = vpop.f32.mrf.mxu1 }
 0x2d5   :  { %v424_v10 = vsel %vm42_vm0, %v249_v8, 0.0 }
 0x2d6   :  { %425 = vadd.xlane.f32.xlu1 %v424_v10  ;;  %v420_v11 = vpop.f32.mrf.mxu1 }
 0x2d7   :  { %v421_v12 = vadd.f32 %v420_v11, %v176_v6 }
 0x2d8   :  { %v697_v13 = vpop.f32.mrf.mxu1 }
 0x2d9   :  { %v427_v14 = vsel %vm42_vm0, %v421_v12, 0.0 }
 0x2da   :  { %428 = vadd.xlane.f32.xlu0 %v427_v14 }
 0x35f   :  { %v426_v19 = vpop.xlane.xlu1 %425 }
 0x360   :  { %v430_v21 = vmul.f32 0.03125, %v426_v19 }
 0x362   :  { %v440_v24 = vrot.slane %v430_v21, %v439_v20 }
 0x363   :  { %v429_v22 = vpop.xlane.xlu0 %428 }
 0x364   :  { %v431_v23 = vmul.f32 0.03125, %v429_v22 }
 0x366   :  { %v444_v25 = vrot.slane %v431_v23, %v439_v20 }
 0x368   :  { %v446_v26 = vsel %vm445_vm4, %v444_v25, %v440_v24 }
 0x369   :  { %701 = vmatmul.mubr.msk.f32.vlgmr.msra.gmra.mxu0 %vm81_vm1, %v446_v26 }
 0x429   :  { %v515_v28 = vpop.f32.mrf.mxu0 }
 0x42a   :  { %v519_v29 = vmax.f32 %v515_v28, 0.0 }
 0x42b   :  { %v702_v30 = vpop.f32.mrf.mxu0 }
 0x42c   :  { %706 = vmatmul.mubr.msk.f32.vlgmr.msra.gmra.mxu1 %vm521_vm6, %v519_v29 }
 0x4ec   :  { %v595_v31 = vpop.f32.mrf.mxu1 }
 0x4ed   :  { %v657_v32 = vmul.f32 -1.442695, %v595_v31 }
 0x4ee   :  { %v707_v33 = vpop.f32.mrf.mxu1 }
 0x4ef   :  { %728 = vpow2.f32 %v657_v32 }
 0x4fc   :  { %v729_v34 = vpop.eup %728 }
 0x4fd   :  { %v602_v35 = vadd.f32 1.0, %v729_v34 }
 0x4ff   :  { %730 = vrcp.f32 %v602_v35 }
 0x50c   :  { %v731_v37 = vpop.eup %730 }
 0x50d   :  { %v608_v38 = vrot.slane %v731_v37, %v607_v36  ;;  %v615_v40 = vrot.slane %v731_v37, %v614_v39 }
 0x50f   :  { %610 = vbcast.lane.b32.xlu1 %v608_v38, 256 }
 0x513   :  { %617 = vbcast.lane.b32.xlu1 %v615_v40, 256 }
 0x581   :  { %v611_v41 = vpop.permute.xlu1 %610 }
 0x582   :  { %v619_v42 = vmul.f32 %v611_v41, %v249_v8 }
 0x584   :  { %v623_v43 = vmul.f32 2.0, %v619_v42 }
 0x585   :  { %v618_v44 = vpop.permute.xlu1 %617 }
 0x586   :  { %v625_v45 = vadd.f32 %v623_v43, %v813_v0  ;;  %v620_v46 = vmul.f32 %v618_v44, %v421_v12 }
 0x588   :  { %627 = vst.msk [vmem:[#allocation2] sm:$0xff] %vm42_vm0, %v625_v45  ;;  %v624_v47 = vmul.f32 2.0, %v620_v46 }
 0x58a   :  { %v626_v48 = vadd.f32 %v818_v1, %v624_v47 }
 0x58c   :  { %628 = vst.msk [vmem:[#allocation2 + $0x8] sm:$0xff] %vm42_vm0, %v626_v48 }
 0x58d   :  { %743 = shalt.err (!%p740_p4)
}
 0x58e   :  { %s758_s27 = smov 128   ;;  %s759_s28 = smov 8  }
 0x58f   :  { %640 = dma.vmem_to_hbm [thread:$0]  %s635_s8, 256, %s885_s9, [#allocation3], %s758_s27, %s758_s27, %s759_s28  }
 0x590   :  { %752 = dma.done.wait [#allocation3], 256  }
 0x591   :  { %753 = vsyncadd [#allocation3], 4294967040 }
 0x592   :  { %644 = vsyncpa [#allocation3], 1 }

</bundles_post_ra>
